<compile_context>
chip_gen: v5e
topology: v5e:2x2
jax: 0.10.0
libtpu: 0.0.40
codegen_flags: <defaults>
</compile_context>

<pallas_src>
import functools

import jax
import jax.numpy as jnp
from jax.experimental import pallas as pl
from jax.experimental.pallas import tpu as pltpu


def _make_pinnks_kernel(use_bf16_act):
    act_dtype = jnp.bfloat16 if use_bf16_act else jnp.float32

    def kernel(x_ref, w1_ref, b1_ref, w2_ref, b2_ref, w3_ref, b3_ref, o_ref):
        # x_ref: (2, TM) tile — row 0 = t feature, row 1 = x feature (batch in lanes).
        t_row = x_ref[0:1, :]   # (1, TM)
        x_row = x_ref[1:2, :]   # (1, TM)

        # Layer 1 (in_dim = 2): VPU broadcast multiply-adds instead of a K=2 MXU
        # pass.  The ScaleLayer shift is already folded into b1 on the host.
        z1 = w1_ref[:, 0:1] * t_row + w1_ref[:, 1:2] * x_row + b1_ref[...]
        h1 = jnp.tanh(z1.astype(act_dtype))                                  # (H1, TM)

        # Layer 2 (H1 -> H2): MXU matmul, f32 accumulate (bf16 inputs if enabled).
        z2 = jnp.dot(w2_ref[...].astype(h1.dtype), h1,
                     preferred_element_type=jnp.float32) + b2_ref[...]
        h2 = jnp.tanh(z2.astype(act_dtype)).astype(jnp.float32)              # (H2, TM)

        # Layer 3 (H2 -> 1): (1, H2) @ (H2, TM) on the MXU — frees VPU/XLU slots
        # that the previous sublane-reduction version consumed.
        out = jnp.dot(w3_ref[...], h2,
                      preferred_element_type=jnp.float32) + b3_ref[...]      # (1, TM)

        o_ref[...] = out.astype(o_ref.dtype)  # lane-dense (1, TM) store

    return kernel


def _choose_tiling(n, *, max_tm=8192, lane=128):
    """Pick (tm, steps): steps even and >= 4 when there is enough work (v7x
    megacore gets an even split with >=2 pipelined steps per TC), tm <= max_tm,
    tm % 128 == 0, and padding waste < one 128-lane group per step."""
    if n > 3 * lane:
        steps = max(4, 2 * pl.cdiv(n, 2 * max_tm))   # always even, >= 4
    else:
        steps = 1
    tm = pl.cdiv(pl.cdiv(n, steps), lane) * lane
    return tm, steps


@functools.partial(jax.jit, static_argnames=("use_bf16_act",))
def pinnks_forward(x, params, *, use_bf16_act=False):
    """x: [N, 2] float32 (rows = collocation points, cols = (t, x)).

    params: dict with w{1,2,3}/b{1,2,3} in [in, out] layout (transposed vs.
    torch.nn.Linear.weight).  Returns [N, 1] float32.
    """
    N, F = x.shape
    assert F == 2
    H1 = params["w1"].shape[1]
    H2 = params["w2"].shape[1]

    # ---- parameter prep: transposed layout, ScaleLayer shift folded into b1.
    # (Lives inside the same jit as the pallas_call, so it is fused/hoisted and
    #  not re-dispatched as separate tiny ops per forward.)
    w1t = params["w1"].T.astype(jnp.float32)                       # (H1, 2)
    shift_col = jnp.array([[10.0], [20.0]], dtype=jnp.float32)
    b1t = params["b1"].T.astype(jnp.float32) + w1t @ shift_col     # (H1, 1)
    w2t = params["w2"].T.astype(jnp.float32)                       # (H2, H1)
    b2t = params["b2"].T.astype(jnp.float32)                       # (H2, 1)
    w3t = params["w3"].T.astype(jnp.float32)                       # (1, H2)
    b3t = params["b3"].astype(jnp.float32)                         # (1, 1)

    # ---- batch-in-lanes layout + adaptive tiling / 128-lane pad granularity.
    tm, steps = _choose_tiling(N)
    n_pad = tm * steps
    xT = x.T.astype(jnp.float32)                                   # (2, N)
    if n_pad != N:
        xT = jnp.pad(xT, ((0, 0), (0, n_pad - N)))

    full = lambda shape: pl.BlockSpec(shape, lambda i: (0, 0))
    # TODO(synk): mark the constant weight/bias BlockSpecs single-buffered
    # (pipeline_mode=pl.Buffered(1)) once a buffer count of 1 is accepted.

    outT = pl.pallas_call(
        _make_pinnks_kernel(use_bf16_act),
        out_shape=jax.ShapeDtypeStruct((1, n_pad), jnp.float32),
        grid_spec=pltpu.PrefetchScalarGridSpec(
            num_scalar_prefetch=0,
            grid=(steps,),
            in_specs=[
                pl.BlockSpec((2, tm), lambda i: (0, i)),  # input tile (batch in lanes)
                full((H1, 2)), full((H1, 1)),             # layer 1 (shift pre-folded)
                full((H2, H1)), full((H2, 1)),            # layer 2
                full((1, H2)), full((1, 1)),              # layer 3 (row vector -> MXU)
            ],
            out_specs=pl.BlockSpec((1, tm), lambda i: (0, i)),
        ),
        compiler_params=pltpu.CompilerParams(
            dimension_semantics=("parallel",),
            vmem_limit_bytes=32 * 1024 * 1024,   # v5e's scoped default is only 16 MiB
        ),
    )(xT, w1t, b1t, w2t, b2t, w3t, b3t)

    return outT[:, :N].T  # (N, 1)


def _has_fast_bf16_eup():
    """bf16 tanh pays off on v6e / v7x (bf16 EUP); skip it on v4/v5."""
    try:
        kind = jax.devices()[0].device_kind.lower()
    except Exception:
        return False
    return ("v6" in kind) or ("v7" in kind) or ("7x" in kind)


def init_params(key, hidden_layers):
    """Deterministic synthetic init (shapes match nn.Linear layers, [in,out])."""
    dims = [2] + list(hidden_layers) + [1]
    params = {}
    for li in range(len(dims) - 1):
        key, kw, kb = jax.random.split(key, 3)
        fan_in, fan_out = dims[li], dims[li + 1]
        bound = 1.0 / jnp.sqrt(jnp.float32(fan_in))
        params[f"w{li + 1}"] = jax.random.uniform(
            kw, (fan_in, fan_out), jnp.float32, -bound, bound
        )
        params[f"b{li + 1}"] = jax.random.uniform(
            kb, (1, fan_out), jnp.float32, -bound, bound
        )
    return params


def pinnks_reference(x, params):
    """Pure-JAX reference of the PyTorch forward, for validation."""
    h = x + jnp.array([[10.0, 20.0]], dtype=jnp.float32)
    h = jnp.tanh(h @ params["w1"] + params["b1"])
    h = jnp.tanh(h @ params["w2"] + params["b2"])
    return h @ params["w3"] + params["b3"]


if __name__ == "__main__":
    key = jax.random.PRNGKey(0)
    hidden_layers = [32, 32]

    k_params, k_x = jax.random.split(key)
    params = init_params(k_params, hidden_layers)

    # Main batch: 4096 collocation points -> 4 even "parallel" grid steps
    # (tm = 1024), so v7x's two TensorCores each get 2 pipelined steps.
    N = 4096
    x = jax.random.uniform(k_x, (N, 2), jnp.float32, -1.0, 1.0)
    ref = pinnks_reference(x, params)

    out = jax.block_until_ready(pinnks_forward(x, params, use_bf16_act=False))
    assert out.shape == (N, 1)
    assert jnp.allclose(out, ref, atol=1e-4, rtol=1e-4), "f32 mismatch vs reference"

    # Optional bf16-tanh fast path on chips with a bf16 EUP (v6e / v7x).
    if _has_fast_bf16_eup():
        out_bf16 = jax.block_until_ready(
            pinnks_forward(x, params, use_bf16_act=True)
        )
        assert out_bf16.shape == (N, 1)
        assert float(jnp.max(jnp.abs(out_bf16 - ref))) < 0.2, "bf16 path diverged"

    # Ragged batch: exercises the 128-lane pad granularity (tm = 640, 4 steps).
    N2 = 2500
    x2 = jax.random.uniform(jax.random.PRNGKey(1), (N2, 2), jnp.float32, -1.0, 1.0)
    out2 = jax.block_until_ready(pinnks_forward(x2, params, use_bf16_act=False))
    assert out2.shape == (N2, 1)
    assert jnp.allclose(out2, pinnks_reference(x2, params), atol=1e-4, rtol=1e-4), \
        "ragged-batch mismatch vs reference"

    print("KERNEL_OK")
</pallas_src>

<mosaic_0001>
module attributes {stable_mosaic.version = 11 : i64} {
  func.func @kernel(%arg0: i32, %arg1: memref<2x1024xf32, #tpu.memory_space<vmem>>, %arg2: memref<32x2xf32, #tpu.memory_space<vmem>>, %arg3: memref<32x1xf32, #tpu.memory_space<vmem>>, %arg4: memref<32x32xf32, #tpu.memory_space<vmem>>, %arg5: memref<32x1xf32, #tpu.memory_space<vmem>>, %arg6: memref<1x32xf32, #tpu.memory_space<vmem>>, %arg7: memref<1x1xf32, #tpu.memory_space<vmem>>, %arg8: memref<1x1024xf32, #tpu.memory_space<vmem>>) attributes {dimension_semantics = [#tpu.dimension_semantics<parallel>], iteration_bounds = array<i64: 4>, scalar_prefetch = 0 : i64, scratch_operands = 0 : i64, tpu.core_type = #tpu.core_type<tc>, window_params = [{transform_indices = @transform_0, window_bounds = array<i64: 2, 1024>}, {pipeline_mode = #tpu.pipeline_mode<synchronous>, transform_indices = @transform_1, window_bounds = array<i64: 32, 2>}, {pipeline_mode = #tpu.pipeline_mode<synchronous>, transform_indices = @transform_2, window_bounds = array<i64: 32, 1>}, {pipeline_mode = #tpu.pipeline_mode<synchronous>, transform_indices = @transform_3, window_bounds = array<i64: 32, 32>}, {pipeline_mode = #tpu.pipeline_mode<synchronous>, transform_indices = @transform_4, window_bounds = array<i64: 32, 1>}, {pipeline_mode = #tpu.pipeline_mode<synchronous>, transform_indices = @transform_5, window_bounds = array<i64: 1, 32>}, {pipeline_mode = #tpu.pipeline_mode<synchronous>, transform_indices = @transform_6, window_bounds = array<i64: 1, 1>}, {transform_indices = @transform_7, window_bounds = array<i64: 1, 1024>}]} {
    %c0 = arith.constant 0 : index
    %c0_0 = arith.constant 0 : index
    %0 = vector.load %arg1[%c0, %c0_0] : memref<2x1024xf32, #tpu.memory_space<vmem>>, vector<1x1024xf32>
    %c1 = arith.constant 1 : index
    %c0_1 = arith.constant 0 : index
    %1 = vector.load %arg1[%c1, %c0_1] : memref<2x1024xf32, #tpu.memory_space<vmem>>, vector<1x1024xf32>
    %c0_2 = arith.constant 0 : index
    %c0_3 = arith.constant 0 : index
    %2 = vector.load %arg2[%c0_2, %c0_3] : memref<32x2xf32, #tpu.memory_space<vmem>>, vector<32x1xf32>
    %3 = vector.broadcast %2 : vector<32x1xf32> to vector<32x1024xf32>
    %4 = vector.broadcast %0 : vector<1x1024xf32> to vector<32x1024xf32>
    %5 = arith.mulf %3, %4 : vector<32x1024xf32>
    %c0_4 = arith.constant 0 : index
    %c1_5 = arith.constant 1 : index
    %6 = vector.load %arg2[%c0_4, %c1_5] : memref<32x2xf32, #tpu.memory_space<vmem>>, vector<32x1xf32>
    %7 = vector.broadcast %6 : vector<32x1xf32> to vector<32x1024xf32>
    %8 = vector.broadcast %1 : vector<1x1024xf32> to vector<32x1024xf32>
    %9 = arith.mulf %7, %8 : vector<32x1024xf32>
    %10 = arith.addf %5, %9 : vector<32x1024xf32>
    %c0_6 = arith.constant 0 : index
    %c0_7 = arith.constant 0 : index
    %11 = vector.load %arg3[%c0_6, %c0_7] : memref<32x1xf32, #tpu.memory_space<vmem>>, vector<32x1xf32>
    %12 = vector.broadcast %11 : vector<32x1xf32> to vector<32x1024xf32>
    %13 = arith.addf %10, %12 : vector<32x1024xf32>
    %14 = math.tanh %13 : vector<32x1024xf32>
    %c0_8 = arith.constant 0 : index
    %c0_9 = arith.constant 0 : index
    %15 = vector.load %arg4[%c0_8, %c0_9] : memref<32x32xf32, #tpu.memory_space<vmem>>, vector<32x32xf32>
    %cst = arith.constant dense<0.000000e+00> : vector<32x1024xf32>
    %16 = tpu.matmul %15, %14, %cst {dimension_numbers = #tpu.dot_dimension_numbers<[1], [0], [0], [1], [0, 0, 1, 1], [], []>} : vector<32x32xf32>, vector<32x1024xf32>, vector<32x1024xf32> -> vector<32x1024xf32>
    %c0_10 = arith.constant 0 : index
    %c0_11 = arith.constant 0 : index
    %17 = vector.load %arg5[%c0_10, %c0_11] : memref<32x1xf32, #tpu.memory_space<vmem>>, vector<32x1xf32>
    %18 = vector.broadcast %17 : vector<32x1xf32> to vector<32x1024xf32>
    %19 = arith.addf %16, %18 : vector<32x1024xf32>
    %20 = math.tanh %19 : vector<32x1024xf32>
    %c0_12 = arith.constant 0 : index
    %c0_13 = arith.constant 0 : index
    %21 = vector.load %arg6[%c0_12, %c0_13] : memref<1x32xf32, #tpu.memory_space<vmem>>, vector<1x32xf32>
    %cst_14 = arith.constant dense<0.000000e+00> : vector<1x1024xf32>
    %22 = tpu.matmul %21, %20, %cst_14 {dimension_numbers = #tpu.dot_dimension_numbers<[1], [0], [0], [1], [0, 0, 1, 1], [], []>} : vector<1x32xf32>, vector<32x1024xf32>, vector<1x1024xf32> -> vector<1x1024xf32>
    %c0_15 = arith.constant 0 : index
    %c0_16 = arith.constant 0 : index
    %23 = vector.load %arg7[%c0_15, %c0_16] : memref<1x1xf32, #tpu.memory_space<vmem>>, vector<1x1xf32>
    %24 = vector.broadcast %23 : vector<1x1xf32> to vector<1x1024xf32>
    %25 = arith.addf %22, %24 : vector<1x1024xf32>
    %c0_17 = arith.constant 0 : index
    %c0_18 = arith.constant 0 : index
    %26 = vector.load %arg8[%c0_17, %c0_18] : memref<1x1024xf32, #tpu.memory_space<vmem>>, vector<1x1024xf32>
    tpu.vector_store %arg8[%c0_17, %c0_18], %25 {strides = array<i32>} : memref<1x1024xf32, #tpu.memory_space<vmem>>, vector<1x1024xf32>,
    return
  }
  func.func @transform_0(%arg0: i32) -> (i32, i32) {
    %c0_i32 = arith.constant 0 : i32
    %c0_i32_0 = arith.constant 0 : i32
    return %c0_i32, %arg0 : i32, i32
  }
  func.func @transform_1(%arg0: i32) -> (i32, i32) {
    %c0_i32 = arith.constant 0 : i32
    %c0_i32_0 = arith.constant 0 : i32
    %c0_i32_1 = arith.constant 0 : i32
    return %c0_i32, %c0_i32_0 : i32, i32
  }
  func.func @transform_2(%arg0: i32) -> (i32, i32) {
    %c0_i32 = arith.constant 0 : i32
    %c0_i32_0 = arith.constant 0 : i32
    %c0_i32_1 = arith.constant 0 : i32
    return %c0_i32, %c0_i32_0 : i32, i32
  }
  func.func @transform_3(%arg0: i32) -> (i32, i32) {
    %c0_i32 = arith.constant 0 : i32
    %c0_i32_0 = arith.constant 0 : i32
    %c0_i32_1 = arith.constant 0 : i32
    return %c0_i32, %c0_i32_0 : i32, i32
  }
  func.func @transform_4(%arg0: i32) -> (i32, i32) {
    %c0_i32 = arith.constant 0 : i32
    %c0_i32_0 = arith.constant 0 : i32
    %c0_i32_1 = arith.constant 0 : i32
    return %c0_i32, %c0_i32_0 : i32, i32
  }
  func.func @transform_5(%arg0: i32) -> (i32, i32) {
    %c0_i32 = arith.constant 0 : i32
    %c0_i32_0 = arith.constant 0 : i32
    %c0_i32_1 = arith.constant 0 : i32
    return %c0_i32, %c0_i32_0 : i32, i32
  }
  func.func @transform_6(%arg0: i32) -> (i32, i32) {
    %c0_i32 = arith.constant 0 : i32
    %c0_i32_0 = arith.constant 0 : i32
    %c0_i32_1 = arith.constant 0 : i32
    return %c0_i32, %c0_i32_0 : i32, i32
  }
  func.func @transform_7(%arg0: i32) -> (i32, i32) {
    %c0_i32 = arith.constant 0 : i32
    %c0_i32_0 = arith.constant 0 : i32
    return %c0_i32, %arg0 : i32, i32
  }
}

</mosaic_0001>

<bundles_post_ra>
// kernel: pinnks_forward.1
= control target key start
LH: loop header
LB: loop body
LE: loop exit
PB: predicated region body
PF: predicated region fallthrough
CT: control target
= control target key end

     0   :  { %s1958_s0 = inlined_call_operand.vmem [shape: f32[2,4096], index: 0, kind: input, shape index: {}]   ;;  %s1959_s1 = inlined_call_operand.vmem [shape: f32[32,2], index: 1, kind: input, shape index: {}]   ;;  %s1960_s2 = inlined_call_operand.vmem [shape: f32[32,1], index: 2, kind: input, shape index: {}]   ;;  %s1961_s3 = inlined_call_operand.vmem [shape: f32[32,32], index: 3, kind: input, shape index: {}]   ;;  %s1962_s4 = inlined_call_operand.vmem [shape: f32[32,1], index: 4, kind: input, shape index: {}]   ;;  %s1963_s5 = inlined_call_operand.vmem [shape: f32[1,32], index: 5, kind: input, shape index: {}]   ;;  %s1964_s6 = inlined_call_operand.<no memory space> [shape: f32[1,1], index: 6, kind: input, shape index: {}]   ;;  %s1965_s7 = inlined_call_operand.hbm [shape: f32[1,4096], index: 7, kind: output, shape index: {}]  }
   0x1   :  { %v12_v0 = vstv %s1964_s6 }
   0x2   :  { %13 = vst [vmem:[#allocation2] sm:$0x1] %v12_v0 }
   0x3   :  { %14 = vsyncpa [#allocation4], 0 }
   0x4   :  { %16 = vsyncpa [#allocation4 + $0x1], 0  ;;  %s1464_s26 = smov 0   ;;  %s1466_s27 = smov 0  }
   0x5   :  { %s1468_s28 = smov 0   ;;  %s1470_s29 = smov 0  }
   0x6 LB: > { %s1124_s6 = sadd.s32 4294967295, %s1417_s29   ;;  %s1125_s30 = sadd.s32 4294967294, %s1417_s29   ;;  %s1417_s29 = sphi %s1470_s29, %s1971_s29   ;;  %s1413_s28 = sphi %s1468_s28, %s1970_s28   ;;  %s1409_s27 = sphi %s1466_s27, %s1969_s27   ;;  %s1405_s26 = sphi %s1464_s26, %s1968_s26  }
   0x7   : > { %s1487_s8 = sadd.s32 1, %s1417_s29   ;;  %s181_s9 = sadd.s32 1, %s1413_s28 }
   0x8   : > { %s178_s10 = ssub.s32 %s1417_s29, %s1487_s8  ;;  %p191_p0 = scmp.ne.s32.totalorder %s1413_s28, %s1409_s27 }
   0x9   : > { %p179_p1 = scmp.eq.s32.totalorder %s178_s10, 0  ;;  %p192_p2 = scmp.eq.s32.totalorder %s1124_s6, 3 }
   0xa   : > { %p197_p3 = scmp.ne.s32.totalorder %s1409_s27, %s1405_s26  ;;  %p198_p4 = scmp.eq.s32.totalorder %s1125_s30, 3 }
   0xb   : > { %s1499_s11 = scalar_select %p179_p1, %s1413_s28, %s181_s9  }
   0xc   : > { %p1501_p5 = por %p192_p2, %p191_p0  ;;  %p1505_p6 = por %p198_p4, %p197_p3 }
   0xd   : > { %p1128_p7 = scmp.ge.s32.totalorder %s1417_s29, 1  ;;  %p243_p8 = scmp.lt.s32.totalorder %s1417_s29, 5 }
   0xf   : > { %p244_p9 = pnand %p1128_p7, %p243_p8 }
  0x10   : > { %s1549_s23 = sshll.u32 (!%p244_p9), %s1124_s6, 3  ;;  %s1375_s20 = scalar_lea.hbm (!%p244_p9), %s1965_s7, 32 }
  0x11   : > { %247 = sbr.rel (%p244_p9) target bundleno = 530 (0x212), region = 48  ;;  %p276_p10 = scmp.lt.s32.totalorder (!%p244_p9), %s1549_s23, 31 }
  0x16   : > { %v288_v1 = vld [vmem:[%s1959_s1 + $0x18] sm:$0xff]  ;;  %v287_v2 = vld [vmem:[%s1959_s1 + $0x10] sm:$0xff]  ;;  %v1419_v3 = vmov 0   ;;  %v286_v4 = vld [vmem:[%s1959_s1 + $0x8] sm:$0xff]  ;;  %v1420_v5 = vmov 1   ;;  %s277_s24 = scalar_select %p276_p10, %s1549_s23, 31 }
  0x17   : > { %1220 = vset.pattern.permute.xlu1 %v1419_v3  ;;  %1218 = vset.pattern.permute.xlu0 %v1419_v3  ;;  %v285_v6 = vld [vmem:[%s1959_s1] sm:$0xff]  ;;  %v458_v7 = vld [vmem:[%s1960_s2 + $0x18] sm:$0xff]  ;;  %v457_v8 = vld [vmem:[%s1960_s2 + $0x10] sm:$0xff]  ;;  %vm571_vm0 = vcmask 261120   ;;  %vm1036_vm1 = vcmask 1042434   ;;  %vm1034_vm2 = vcmask 1040384  }
  0x18   : > { %306 = vperm.xlu0 %1218, %v288_v1   ;;  %301 = vperm.xlu1 %1220, %v287_v2   ;;  %v455_v9 = vld [vmem:[%s1960_s2] sm:$0xff]  ;;  %v456_v10 = vld [vmem:[%s1960_s2 + $0x8] sm:$0xff]  ;;  %v550_v11 = vld [vmem:[%s1962_s4 + $0x18] sm:$0xff]  ;;  %s1131_s25 = sshll.u32 %s277_s24, 1  ;;  %s272_s24 = sand.u32 1, %s1409_s27   ;;  %vm1040_vm3 = vcmask 1044484  }
  0x19   : > { %1222 = vset.pattern.permute.xlu2 %v1419_v3  ;;  %v849_v12 = vld [vmem:[#allocation2] sm:$0x1]  ;;  %v549_v13 = vld [vmem:[%s1962_s4 + $0x10] sm:$0xff]  ;;  %v548_v14 = vld [vmem:[%s1962_s4 + $0x8] sm:$0xff]  ;;  %s279_s10 = scalar_lea.vmem %s1958_s0, %s1131_s25  ;;  %s1921_s25 = sshll.u32 %s272_s24, 3  ;;  %vm1042_vm4 = vcmask 1046534  }
  0x1a   : > { %296 = vperm.xlu2 %1222, %v286_v4   ;;  %v547_v15 = vld [vmem:[%s1962_s4] sm:$0xff]  ;;  %vm1038_vm5 = vcmask 1041408   ;;  %vm1044_vm6 = vcmask 1045508   ;;  %s274_s6 = scalar_lea.vmem [#allocation3], %s1921_s25  ;;  %vm1046_vm7 = vcmask 1043456  }
  0x1b   : > { %v1132_v18 = vld [vmem:[%s279_s10 + $0x1] ss:$2 sm:$0xff]  ;;  %v282_v19 = vld [vmem:[%s279_s10] ss:$2 sm:$0xff]  ;;  %s1061_s10 = scalar_lea.hbm %s1965_s7, %s1549_s23  ;;  %s1063_s14 = sshll.u32 %s274_s6, 4  ;;  %s1064_s14 = int_to_ptr.vmem [resolvable:$true] %s1063_s14 }
  0x1c   : > { %v1560_v22 = vperm.slane %v1132_v18, 0  ;;  %v1562_v23 = vperm.slane %v1132_v18, 1  ;;  %v1564_v24 = vperm.slane %v1132_v18, 2  ;;  %v310_v25 = vperm.slane %v282_v19, 0  ;;  %s1065_s15 = sshll.u32 %s1061_s10, 4  ;;  %s1051_s23 = scalar_lea.sflag [#allocation4], %s272_s24  ;;  %s1066_s15 = int_to_ptr.hbm [resolvable:$true] %s1065_s15 }
  0x1d   : > { %v311_v26 = vperm.slane %v282_v19, 1  ;;  %v1566_v27 = vperm.slane %v1132_v18, 3  ;;  %v1568_v28 = vperm.slane %v1132_v18, 4  ;;  %v312_v29 = vperm.slane %v282_v19, 2  ;;  %s1369_s16 = sshra.s32 %s1066_s15, 4  ;;  %s1370_s16 = int_to_ptr.hbm [resolvable:$true] %s1369_s16 }
  0x1e   : > { %v313_v31 = vperm.slane %v282_v19, 3  ;;  %v1574_v34 = vperm.slane %v282_v19, 4  ;;  %v1590_v43 = vperm.slane %v282_v19, 5  ;;  %v1592_v44 = vperm.slane %v1132_v18, 5  ;;  %s1371_s17 = scalar_lea.hbm %s1370_s16, 8  ;;  %p1376_p0 = scmp.lt.s32.totalorder %s1370_s16, %s1965_s7 }
  0x1f   : > { %v1594_v45 = vperm.slane %v282_v19, 6  ;;  %v1596_v46 = vperm.slane %v1132_v18, 6  ;;  %v1598_v47 = vperm.slane %v282_v19, 7  ;;  %v1600_v51 = vperm.slane %v1132_v18, 7  ;;  %p1372_p11 = scmp.ne.s32.totalorder %s1370_s16, %s1371_s17  ;;  %p1377_p1 = scmp.lt.s32.totalorder %s1375_s20, %s1371_s17 }
  0x20   : > { %1219 = vset.pattern.permute.xlu0 %v1420_v5  ;;  %1221 = vset.pattern.permute.xlu1 %v1420_v5 }
  0x21   : > { %371 = vperm.xlu0 %1219, %v288_v1   ;;  %367 = vperm.xlu1 %1221, %v287_v2   ;;  %p1373_p12 = pnand %p1372_p11, %p1501_p5  ;;  %p1378_p2 = por %p1377_p1, %p1376_p0 }
  0x22   : > { %1223 = vset.pattern.permute.xlu2 %v1420_v5 }
  0x23   : > { %363 = vperm.xlu2 %1223, %v286_v4   ;;  %p1374_p13 = pneg %p1373_p12 }
  0x25   : > { %p1379_p3 = pnand %p1378_p2, %p1374_p13 }
  0x29   : > { %1224 = vset.pattern.permute.xlu1 %v1419_v3  ;;  %359 = vperm.xlu0 %1219, %v285_v6  }
  0x2a   : > { %476 = vperm.xlu1 %1224, %v458_v7  }
  0x2b   : > { %1225 = vset.pattern.permute.xlu2 %v1419_v3 }
  0x2c   : > { %291 = vperm.xlu2 %1225, %v285_v6  }
  0x31   : > { %1226 = vset.pattern.permute.xlu0 %v1419_v3 }
  0x32   : > { %471 = vperm.xlu1 %1224, %v457_v8   ;;  %461 = vperm.xlu0 %1226, %v455_v9  }
  0x34   : > { %466 = vperm.xlu2 %1225, %v456_v10  }
  0x3a   : > { %568 = vperm.xlu1 %1224, %v550_v11   ;;  %852 = vperm.xlu0 %1226, %v849_v12  }
  0x3c   : > { %563 = vperm.xlu2 %1225, %v549_v13  }
  0x42   : > { %558 = vperm.xlu1 %1224, %v548_v14  }
  0x44   : > { %553 = vperm.xlu2 %1225, %v547_v15  }
  0x74   : > { %v1551_v16 = vpop.permute.xlu2 %296 }
  0x75   : > { %v334_v32 = vmul.f32 %v310_v25, %v1551_v16  ;;  %v335_v33 = vmul.f32 %v311_v26, %v1551_v16  ;;  %v336_v37 = vmul.f32 %v312_v29, %v1551_v16  ;;  %v337_v39 = vmul.f32 %v313_v31, %v1551_v16 }
  0x76   : > { %v338_v41 = vmul.f32 %v1574_v34, %v1551_v16 }
  0x7d   : > { %v1555_v17 = vpop.permute.xlu2 %363 }
  0x7e   : > { %v399_v35 = vmul.f32 %v1560_v22, %v1555_v17  ;;  %v400_v36 = vmul.f32 %v1562_v23, %v1555_v17  ;;  %v401_v38 = vmul.f32 %v1564_v24, %v1555_v17  ;;  %v402_v40 = vmul.f32 %v1566_v27, %v1555_v17 }
  0x7f   : > { %v403_v42 = vmul.f32 %v1568_v28, %v1555_v17 }
  0x80   : > { %v431_v48 = vadd.f32 %v399_v35, %v334_v32  ;;  %v432_v49 = vadd.f32 %v400_v36, %v335_v33  ;;  %v433_v50 = vadd.f32 %v401_v38, %v336_v37  ;;  %v434_v54 = vadd.f32 %v402_v40, %v337_v39 }
  0x81   : > { %v1612_v57 = vadd.f32 %v403_v42, %v338_v41  ;;  %v1672_v40 = vmul.f32 %v1594_v45, %v1551_v16 }
  0x86   : > { %v1570_v30 = vpop.permute.xlu2 %291 }
  0x87   : > { %v1607_v55 = vmul.f32 %v310_v25, %v1570_v30  ;;  %v1610_v56 = vmul.f32 %v311_v26, %v1570_v30  ;;  %v1615_v60 = vmul.f32 %v312_v29, %v1570_v30  ;;  %v1618_v61 = vmul.f32 %v313_v31, %v1570_v30 }
  0x8a   : > { %v302_v20 = vpop.permute.xlu1 %301  ;;  %v307_v21 = vpop.permute.xlu0 %306 }
  0x8b   : > { %v350_v58 = vmul.f32 %v310_v25, %v307_v21  ;;  %v351_v59 = vmul.f32 %v311_v26, %v307_v21  ;;  %v352_v62 = vmul.f32 %v312_v29, %v307_v21  ;;  %v353_v63 = vmul.f32 %v313_v31, %v307_v21 }
  0x8c   : > { %v342_v0 = vmul.f32 %v310_v25, %v302_v20  ;;  %v343_v1 = vmul.f32 %v311_v26, %v302_v20  ;;  %v344_v2 = vmul.f32 %v312_v29, %v302_v20  ;;  %v345_v3 = vmul.f32 %v313_v31, %v302_v20 }
  0x8d   : > { %v354_v4 = vmul.f32 %v1574_v34, %v307_v21  ;;  %v355_v5 = vmul.f32 %v1590_v43, %v307_v21  ;;  %v1631_v10 = vmul.f32 %v1594_v45, %v307_v21  ;;  %v1637_v13 = vmul.f32 %v1598_v47, %v307_v21 }
  0x8e   : > { %v1622_v6 = vpop.permute.xlu2 %466  ;;  %v1640_v14 = vmul.f32 %v1574_v34, %v302_v20  ;;  %v1644_v18 = vmul.f32 %v1590_v43, %v302_v20  ;;  %v1647_v19 = vmul.f32 %v1594_v45, %v302_v20  ;;  %v1650_v25 = vmul.f32 %v1598_v47, %v302_v20 }
  0x8f   : > { %v487_v12 = vadd.f32 %v1622_v6, %v431_v48  ;;  %v488_v15 = vadd.f32 %v1622_v6, %v432_v49  ;;  %v489_v26 = vadd.f32 %v1622_v6, %v433_v50  ;;  %v490_v29 = vadd.f32 %v1622_v6, %v434_v54 }
  0x90   : > { %v1656_v21 = vmul.f32 %v1590_v43, %v1551_v16  ;;  %v1660_v31 = vmul.f32 %v1592_v44, %v1555_v17 }
  0x91   : > { %1227 = vtanh.f32 %v487_v12  ;;  %v1699_v12 = vmul.f32 %v1600_v51, %v1555_v17 }
  0x92   : > { %1229 = vtanh.f32 %v488_v15 }
  0x93   : > { %v1602_v52 = vpop.permute.xlu0 %371  ;;  %v1604_v53 = vpop.permute.xlu1 %367  ;;  %1231 = vtanh.f32 %v489_v26 }
  0x94   : > { %v415_v7 = vmul.f32 %v1560_v22, %v1602_v52  ;;  %v416_v8 = vmul.f32 %v1562_v23, %v1602_v52  ;;  %v417_v9 = vmul.f32 %v1564_v24, %v1602_v52  ;;  %v418_v11 = vmul.f32 %v1566_v27, %v1602_v52 }
  0x95   : > { %v419_v20 = vmul.f32 %v1568_v28, %v1602_v52  ;;  %v420_v39 = vmul.f32 %v1592_v44, %v1602_v52  ;;  %v407_v50 = vmul.f32 %v1560_v22, %v1604_v53  ;;  %v408_v54 = vmul.f32 %v1562_v23, %v1604_v53 }
  0x96   : > { %v447_v33 = vadd.f32 %v415_v7, %v350_v58  ;;  %v448_v35 = vadd.f32 %v416_v8, %v351_v59  ;;  %v449_v36 = vadd.f32 %v417_v9, %v352_v62  ;;  %v450_v38 = vadd.f32 %v418_v11, %v353_v63 }
  0x97   : > { %v409_v58 = vmul.f32 %v1564_v24, %v1604_v53  ;;  %v410_v59 = vmul.f32 %v1566_v27, %v1604_v53  ;;  %v451_v62 = vadd.f32 %v419_v20, %v354_v4  ;;  %v452_v7 = vadd.f32 %v420_v39, %v355_v5  ;;  %v1701_v4 = vpop.eup %1227 }
  0x98   : > { %v1690_v8 = vmul.f32 %v1596_v46, %v1555_v17  ;;  %v1695_v11 = vmul.f32 %v1598_v47, %v1551_v16  ;;  %v1706_v26 = vpop.eup %1229 }
  0x99   : > { %v1710_v20 = vpop.eup %1231 }
  0x9b   : > { %v1662_v32 = vpop.permute.xlu0 %359 }
  0x9c   : > { %v1666_v37 = vpop.permute.xlu1 %476  ;;  %v391_v63 = vmul.f32 %v1560_v22, %v1662_v32  ;;  %v439_v22 = vadd.f32 %v407_v50, %v342_v0  ;;  %v392_v5 = vmul.f32 %v1562_v23, %v1662_v32  ;;  %v393_v16 = vmul.f32 %v1564_v24, %v1662_v32 }
  0x9d   : > { %v503_v41 = vadd.f32 %v1666_v37, %v447_v33  ;;  %v504_v42 = vadd.f32 %v1666_v37, %v448_v35  ;;  %v505_v48 = vadd.f32 %v1666_v37, %v449_v36  ;;  %v506_v49 = vadd.f32 %v1666_v37, %v450_v38 }
  0x9e   : > { %v507_v9 = vadd.f32 %v1666_v37, %v451_v62  ;;  %v508_v15 = vadd.f32 %v1666_v37, %v452_v7  ;;  %v440_v33 = vadd.f32 %v408_v54, %v343_v1  ;;  %v441_v35 = vadd.f32 %v409_v58, %v344_v2 }
  0x9f   : > { %1233 = vtanh.f32 %v503_v41  ;;  %v442_v36 = vadd.f32 %v410_v59, %v345_v3  ;;  %v423_v0 = vadd.f32 %v391_v63, %v1607_v55  ;;  %v394_v23 = vmul.f32 %v1566_v27, %v1662_v32 }
  0xa0   : > { %1235 = vtanh.f32 %v504_v42  ;;  %v421_v1 = vmul.f32 %v1596_v46, %v1602_v52  ;;  %v424_v55 = vadd.f32 %v392_v5, %v1610_v56  ;;  %v422_v27 = vmul.f32 %v1600_v51, %v1602_v52 }
  0xa1   : > { %1237 = vtanh.f32 %v505_v48  ;;  %v411_v50 = vmul.f32 %v1568_v28, %v1604_v53  ;;  %v426_v56 = vadd.f32 %v394_v23, %v1618_v61  ;;  %v412_v52 = vmul.f32 %v1592_v44, %v1604_v53 }
  0xa2   : > { %1239 = vtanh.f32 %v506_v49  ;;  %v425_v49 = vadd.f32 %v393_v16, %v1615_v60  ;;  %v453_v62 = vadd.f32 %v421_v1, %v1631_v10  ;;  %v413_v60 = vmul.f32 %v1596_v46, %v1604_v53 }
  0xa3   : > { %1241 = vtanh.f32 %v490_v29  ;;  %v414_v61 = vmul.f32 %v1600_v51, %v1604_v53  ;;  %v491_v10 = vadd.f32 %v1622_v6, %v1612_v57  ;;  %v436_v53 = vadd.f32 %v1660_v31, %v1656_v21 }
  0xa4   : > { %v1712_v17 = vpop.permute.xlu1 %471  ;;  %v1714_v38 = vpop.permute.xlu0 %461  ;;  %1243 = vtanh.f32 %v507_v9  ;;  %v454_v9 = vadd.f32 %v422_v27, %v1637_v13  ;;  %v509_v5 = vadd.f32 %v1666_v37, %v453_v62  ;;  %v444_v13 = vadd.f32 %v412_v52, %v1644_v18 }
  0xa5   : > { %v1234_v2 = vpop.eup %1233  ;;  %v495_v3 = vadd.f32 %v1712_v17, %v439_v22  ;;  %v496_v24 = vadd.f32 %v1712_v17, %v440_v33  ;;  %v497_v39 = vadd.f32 %v1712_v17, %v441_v35  ;;  %v498_v29 = vadd.f32 %v1712_v17, %v442_v36 }
  0xa6   : > { %v1236_v41 = vpop.eup %1235  ;;  %596 = vmatpush.msra.mxu0 %v1234_v2  ;;  %1245 = vtanh.f32 %v508_v15  ;;  %v479_v48 = vadd.f32 %v1714_v38, %v423_v0  ;;  %v480_v58 = vadd.f32 %v1714_v38, %v424_v55  ;;  %v481_v59 = vadd.f32 %v1714_v38, %v425_v49  ;;  %v544_v49 = vld [vmem:[%s1961_s3 + $0x8] sm:$0xff] }
  0xa7   : > { %v1238_v42 = vpop.eup %1237  ;;  %625 = vmatpush.msra.mxu1 %v1236_v41  ;;  %1247 = vtanh.f32 %v495_v3  ;;  %v482_v7 = vadd.f32 %v1714_v38, %v426_v56  ;;  %v443_v15 = vadd.f32 %v411_v50, %v1640_v14  ;;  %v510_v35 = vadd.f32 %v1666_v37, %v454_v9 }
  0xa8   : > { %v1240_v54 = vpop.eup %1239  ;;  %654 = vmatpush.msra.mxu2 %v1238_v42  ;;  %1249 = vtanh.f32 %v496_v24  ;;  %v445_v0 = vadd.f32 %v413_v60, %v1647_v19  ;;  %v437_v14 = vadd.f32 %v1690_v8, %v1672_v40  ;;  %v500_v23 = vadd.f32 %v1712_v17, %v444_v13  ;;  %v545_v60 = vld [vmem:[%s1961_s3 + $0x10] sm:$0xff] }
  0xa9   : > { %683 = vmatpush.msra.mxu3 %v1240_v54  ;;  %1251 = vtanh.f32 %v497_v39  ;;  %v1242_v63 = vpop.eup %1241  ;;  %v499_v16 = vadd.f32 %v1712_v17, %v443_v15  ;;  %v446_v37 = vadd.f32 %v414_v61, %v1650_v25  ;;  %v438_v18 = vadd.f32 %v1699_v12, %v1695_v11 }
  0xaa   : > { %1253 = vtanh.f32 %v498_v29  ;;  %v1744_v22 = vpop.eup %1243  ;;  %v501_v31 = vadd.f32 %v1712_v17, %v445_v0  ;;  %v330_v19 = vmul.f32 %v1574_v34, %v1570_v30  ;;  %v395_v40 = vmul.f32 %v1568_v28, %v1662_v32  ;;  %v1779_v28 = vld [vmem:[%s1961_s3] sm:$0xff] }
  0xab   : > { %1255 = vtanh.f32 %v479_v48  ;;  %v502_v25 = vadd.f32 %v1712_v17, %v446_v37  ;;  %v331_v11 = vmul.f32 %v1590_v43, %v1570_v30  ;;  %v396_v12 = vmul.f32 %v1592_v44, %v1662_v32 }
  0xac   : > { %v1750_v33 = vpop.eup %1245  ;;  %1257 = vtanh.f32 %v480_v58  ;;  %v332_v34 = vmul.f32 %v1594_v45, %v1570_v30  ;;  %v397_v43 = vmul.f32 %v1596_v46, %v1662_v32  ;;  %v492_v44 = vadd.f32 %v1622_v6, %v436_v53 }
  0xad   : > { %v1248_v36 = vpop.eup %1247  ;;  %1259 = vtanh.f32 %v481_v59  ;;  %v398_v17 = vmul.f32 %v1600_v51, %v1662_v32  ;;  %v493_v45 = vadd.f32 %v1622_v6, %v437_v14  ;;  %v427_v46 = vadd.f32 %v395_v40, %v330_v19 }
  0xae   : > { %v1250_v57 = vpop.eup %1249  ;;  %597 = vmatpush.msra.mxu0 %v1248_v36  ;;  %1261 = vtanh.f32 %v482_v7  ;;  %v428_v24 = vadd.f32 %v396_v12, %v331_v11  ;;  %v429_v51 = vadd.f32 %v397_v43, %v332_v34  ;;  %v1850_v36 = vpop.permute.xlu1 %568 }
  0xaf   : > { %v1252_v21 = vpop.eup %1251  ;;  %626 = vmatpush.msra.mxu1 %v1250_v57  ;;  %1263 = vtanh.f32 %v509_v5 }
  0xb0   : > { %v1254_v8 = vpop.eup %1253  ;;  %655 = vmatpush.msra.mxu2 %v1252_v21  ;;  %598 = vmatpush.msra.mxu0 %v1701_v4  ;;  %1265 = vtanh.f32 %v510_v35  ;;  %v485_v29 = vadd.f32 %v1714_v38, %v429_v51 }
  0xb1   : > { %v1256_v1 = vpop.eup %1255  ;;  %684 = vmatpush.msra.mxu3 %v1254_v8  ;;  %627 = vmatpush.msra.mxu1 %v1706_v26  ;;  %1267 = vtanh.f32 %v499_v16  ;;  %v333_v26 = vmul.f32 %v1598_v47, %v1570_v30  ;;  %v483_v47 = vadd.f32 %v1714_v38, %v427_v46 }
  0xb2   : > { %v1258_v4 = vpop.eup %1257  ;;  %656 = vmatpush.msra.mxu2 %v1710_v20  ;;  %599 = vmatpush.msra.mxu0 %v1256_v1  ;;  %1269 = vtanh.f32 %v500_v23  ;;  %v494_v20 = vadd.f32 %v1622_v6, %v438_v18  ;;  %v484_v6 = vadd.f32 %v1714_v38, %v428_v24 }
  0xb3   : > { %v1260_v2 = vpop.eup %1259  ;;  %685 = vmatpush.msra.mxu3 %v1242_v63  ;;  %628 = vmatpush.msra.mxu1 %v1258_v4  ;;  %1271 = vtanh.f32 %v501_v31  ;;  %v430_v39 = vadd.f32 %v398_v17, %v333_v26  ;;  %v546_v63 = vld [vmem:[%s1961_s3 + $0x18] sm:$0xff] }
  0xb4   : > { %v1262_v3 = vpop.eup %1261  ;;  %657 = vmatpush.msra.mxu2 %v1260_v2  ;;  %1133 = vmatmul.msk.f32.vlgmr.msra.gmra.mxu0 %vm571_vm0, %v1779_v28  ;;  %1273 = vtanh.f32 %v502_v25 }
  0xb5   : > { %v1264_v30 = vpop.eup %1263  ;;  %686 = vmatpush.msra.mxu3 %v1262_v3  ;;  %1137 = vmatmul.msk.f32.vlgmr.msra.gmra.mxu1 %vm571_vm0, %v1779_v28  ;;  %1275 = vtanh.f32 %v491_v10  ;;  %v486_v27 = vadd.f32 %v1714_v38, %v430_v39  ;;  %v1848_v10 = vpop.permute.xlu2 %563 }
  0xb6   : > { %v1266_v32 = vpop.eup %1265  ;;  %1141 = vmatmul.msk.f32.vlgmr.msra.gmra.mxu2 %vm571_vm0, %v1779_v28  ;;  %1145 = vmatmul.msk.f32.vlgmr.msra.gmra.mxu3 %vm571_vm0, %v1779_v28  ;;  %1277 = vtanh.f32 %v492_v44  ;;  %v1859_v40 = vpop.permute.xlu1 %558 }
  0xb7   : > { %v1268_v41 = vpop.eup %1267  ;;  %712 = vmatpush.msrb.mxu0 %v1744_v22  ;;  %741 = vmatpush.msrb.mxu1 %v1750_v33  ;;  %1279 = vtanh.f32 %v493_v45 }
  0xb8   : > { %v1270_v55 = vpop.eup %1269  ;;  %770 = vmatpush.msrb.mxu2 %v1264_v30  ;;  %799 = vmatpush.msrb.mxu3 %v1266_v32  ;;  %1281 = vtanh.f32 %v494_v20 }
  0xb9   : > { %v1272_v42 = vpop.eup %1271  ;;  %713 = vmatpush.msrb.mxu0 %v1268_v41  ;;  %742 = vmatpush.msrb.mxu1 %v1270_v55  ;;  %1283 = vtanh.f32 %v483_v47 }
  0xba   : > { %v1274_v48 = vpop.eup %1273  ;;  %771 = vmatpush.msrb.mxu2 %v1272_v42  ;;  %1285 = vtanh.f32 %v484_v6  ;;  %v1881_v42 = vld [vmem:[%s1963_s5] sm:$0x1] }
  0xbb   : > { %v1276_v50 = vpop.eup %1275  ;;  %800 = vmatpush.msrb.mxu3 %v1274_v48  ;;  %1287 = vtanh.f32 %v485_v29 }
  0xbc   : > { %v1278_v54 = vpop.eup %1277  ;;  %714 = vmatpush.msrb.mxu0 %v1276_v50  ;;  %1289 = vtanh.f32 %v486_v27 }
  0xbd   : > { %v1280_v58 = vpop.eup %1279  ;;  %743 = vmatpush.msrb.mxu1 %v1278_v54  ;;  %1134 = vmatmul.msk.f32.gmra.mxu0 %vm571_vm0, %v544_v49  ;;  %v1852_v16 = vpop.permute.xlu2 %553 }
  0xbe   : > { %v1282_v38 = vpop.eup %1281  ;;  %772 = vmatpush.msrb.mxu2 %v1280_v58  ;;  %1138 = vmatmul.msk.f32.gmra.mxu1 %vm571_vm0, %v544_v49 }
  0xbf   : > { %v1284_v56 = vpop.eup %1283  ;;  %801 = vmatpush.msrb.mxu3 %v1282_v38  ;;  %1142 = vmatmul.msk.f32.gmra.mxu2 %vm571_vm0, %v544_v49 }
  0xc0   : > { %v1286_v52 = vpop.eup %1285  ;;  %715 = vmatpush.msrb.mxu0 %v1284_v56  ;;  %1146 = vmatmul.msk.f32.gmra.mxu3 %vm571_vm0, %v544_v49 }
  0xc1   : > { %v1288_v59 = vpop.eup %1287  ;;  %744 = vmatpush.msrb.mxu1 %v1286_v52 }
  0xc2   : > { %v1290_v62 = vpop.eup %1289  ;;  %773 = vmatpush.msrb.mxu2 %v1288_v59 }
  0xc3   : > { %802 = vmatpush.msrb.mxu3 %v1290_v62 }
  0xc5   : > { %1135 = vmatmul.msk.f32.gmra.mxu0 %vm571_vm0, %v545_v60 }
  0xc6   : > { %1139 = vmatmul.msk.f32.gmra.mxu1 %vm571_vm0, %v545_v60 }
  0xc7   : > { %1143 = vmatmul.msk.f32.gmra.mxu2 %vm571_vm0, %v545_v60 }
  0xc8   : > { %1147 = vmatmul.msk.f32.gmra.mxu3 %vm571_vm0, %v545_v60 }
  0xcd   : > { %1136 = vmatmul.msk.f32.gmra.mxu0 %vm571_vm0, %v546_v63 }
  0xce   : > { %1140 = vmatmul.msk.f32.gmra.mxu1 %vm571_vm0, %v546_v63 }
  0xcf   : > { %1144 = vmatmul.msk.f32.gmra.mxu2 %vm571_vm0, %v546_v63 }
  0xd0   : > { %1148 = vmatmul.msk.f32.gmra.mxu3 %vm571_vm0, %v546_v63 }
  0xd5   : > { %1149 = vmatmul.msk.f32.vlgmr.msrb.gmra.mxu0 %vm571_vm0, %v1779_v28 }
  0xd6   : > { %1153 = vmatmul.msk.f32.vlgmr.msrb.gmra.mxu1 %vm571_vm0, %v1779_v28 }
  0xd7   : > { %1157 = vmatmul.msk.f32.vlgmr.msrb.gmra.mxu2 %vm571_vm0, %v1779_v28 }
  0xd8   : > { %1161 = vmatmul.msk.f32.vlgmr.msrb.gmra.mxu3 %vm571_vm0, %v1779_v28 }
  0xdd   : > { %1150 = vmatmul.msk.f32.gmra.mxu0 %vm571_vm0, %v544_v49 }
  0xde   : > { %1154 = vmatmul.msk.f32.gmra.mxu1 %vm571_vm0, %v544_v49 }
  0xdf   : > { %1158 = vmatmul.msk.f32.gmra.mxu2 %vm571_vm0, %v544_v49 }
  0xe0   : > { %1162 = vmatmul.msk.f32.gmra.mxu3 %vm571_vm0, %v544_v49 }
  0xe5   : > { %1151 = vmatmul.msk.f32.gmra.mxu0 %vm571_vm0, %v545_v60 }
  0xe6   : > { %1155 = vmatmul.msk.f32.gmra.mxu1 %vm571_vm0, %v545_v60 }
  0xe7   : > { %1159 = vmatmul.msk.f32.gmra.mxu2 %vm571_vm0, %v545_v60 }
  0xe8   : > { %1163 = vmatmul.msk.f32.gmra.mxu3 %vm571_vm0, %v545_v60 }
  0xed   : > { %1152 = vmatmul.msk.f32.gmra.mxu0 %vm571_vm0, %v546_v63 }
  0xee   : > { %1156 = vmatmul.msk.f32.gmra.mxu1 %vm571_vm0, %v546_v63 }
  0xef   : > { %1160 = vmatmul.msk.f32.gmra.mxu2 %vm571_vm0, %v546_v63 }
  0xf0   : > { %1164 = vmatmul.msk.f32.gmra.mxu3 %vm571_vm0, %v546_v63 }
 0x131   : > { %v601_v7 = vpop.f32.mrf.mxu0 }
 0x132   : > { %v630_v9 = vpop.f32.mrf.mxu1  ;;  %v602_v0 = vadd.f32 %v601_v7, %v1852_v16 }
 0x133   : > { %v631_v14 = vadd.f32 %v630_v9, %v1852_v16 }
 0x134   : > { %1291 = vtanh.f32 %v602_v0 }
 0x135   : > { %1293 = vtanh.f32 %v631_v14 }
 0x139   : > { %v659_v61 = vpop.f32.mrf.mxu2  ;;  %v688_v22 = vpop.f32.mrf.mxu3 }
 0x13a   : > { %v604_v5 = vpop.f32.mrf.mxu0  ;;  %v1292_v28 = vpop.eup %1291  ;;  %v660_v30 = vadd.f32 %v659_v61, %v1852_v16  ;;  %v689_v51 = vadd.f32 %v688_v22, %v1852_v16 }
 0x13b   : > { %v633_v15 = vpop.f32.mrf.mxu1  ;;  %v605_v25 = vadd.f32 %v604_v5, %v1859_v40  ;;  %v1294_v26 = vpop.eup %1293 }
 0x13c   : > { %v634_v11 = vadd.f32 %v633_v15, %v1859_v40 }
 0x142   : > { %v662_v33 = vpop.f32.mrf.mxu2  ;;  %v607_v35 = vpop.f32.mrf.mxu0 }
 0x143   : > { %v691_v13 = vpop.f32.mrf.mxu3  ;;  %v636_v53 = vpop.f32.mrf.mxu1  ;;  %v608_v19 = vadd.f32 %v607_v35, %v1848_v10  ;;  %v663_v46 = vadd.f32 %v662_v33, %v1859_v40 }
 0x144   : > { %v637_v8 = vadd.f32 %v636_v53, %v1848_v10  ;;  %v692_v20 = vadd.f32 %v691_v13, %v1859_v40 }
 0x14a   : > { %v665_v57 = vpop.f32.mrf.mxu2  ;;  %v610_v23 = vpop.f32.mrf.mxu0 }
 0x14b   : > { %v694_v37 = vpop.f32.mrf.mxu3  ;;  %v611_v18 = vadd.f32 %v610_v23, %v1850_v36  ;;  %v639_v21 = vpop.f32.mrf.mxu1  ;;  %v666_v34 = vadd.f32 %v665_v57, %v1848_v10 }
 0x14c   : > { %v640_v31 = vadd.f32 %v639_v21, %v1850_v36  ;;  %v695_v17 = vadd.f32 %v694_v37, %v1848_v10 }
 0x14d   : > { %1295 = vtanh.f32 %v611_v18 }
 0x14e   : > { %1297 = vtanh.f32 %v640_v31 }
 0x14f   : > { %1299 = vtanh.f32 %v608_v19 }
 0x150   : > { %1301 = vtanh.f32 %v637_v8 }
 0x151   : > { %1303 = vtanh.f32 %v605_v25 }
 0x152   : > { %v668_v12 = vpop.f32.mrf.mxu2  ;;  %v1864_v1 = vpop.f32.mrf.mxu0  ;;  %1305 = vtanh.f32 %v634_v11 }
 0x153   : > { %v669_v43 = vadd.f32 %v668_v12, %v1850_v36  ;;  %v697_v4 = vpop.f32.mrf.mxu3  ;;  %v746_v44 = vpop.f32.mrf.mxu1  ;;  %v718_v63 = vadd.f32 %v1864_v1, %v1852_v16 }
 0x154   : > { %v698_v2 = vadd.f32 %v697_v4, %v1850_v36  ;;  %v1296_v45 = vpop.eup %1295  ;;  %v747_v7 = vadd.f32 %v746_v44, %v1852_v16 }
 0x155   : > { %1307 = vtanh.f32 %v669_v43  ;;  %v1298_v3 = vpop.eup %1297  ;;  %871 = vmatpush.msra.mxu0 %v1296_v45 }
 0x156   : > { %1309 = vtanh.f32 %v698_v2  ;;  %v1300_v24 = vpop.eup %1299  ;;  %891 = vmatpush.msra.mxu1 %v1298_v3 }
 0x157   : > { %1311 = vtanh.f32 %v666_v34  ;;  %v1302_v47 = vpop.eup %1301  ;;  %872 = vmatpush.msra.mxu0 %v1300_v24 }
 0x158   : > { %1313 = vtanh.f32 %v695_v17  ;;  %v1304_v32 = vpop.eup %1303  ;;  %892 = vmatpush.msra.mxu1 %v1302_v47 }
 0x159   : > { %1315 = vtanh.f32 %v663_v46  ;;  %v1306_v6 = vpop.eup %1305  ;;  %873 = vmatpush.msra.mxu0 %v1304_v32 }
 0x15a   : > { %1317 = vtanh.f32 %v692_v20  ;;  %v1874_v39 = vpop.f32.mrf.mxu2  ;;  %v720_v41 = vpop.f32.mrf.mxu0  ;;  %893 = vmatpush.msra.mxu1 %v1306_v6 }
 0x15b   : > { %v1308_v29 = vpop.eup %1307  ;;  %1319 = vtanh.f32 %v660_v30  ;;  %v1876_v55 = vpop.f32.mrf.mxu3  ;;  %874 = vmatpush.msra.mxu0 %v1292_v28  ;;  %v721_v53 = vadd.f32 %v720_v41, %v1859_v40  ;;  %v776_v28 = vadd.f32 %v1874_v39, %v1852_v16 }
 0x15c   : > { %v749_v27 = vpop.f32.mrf.mxu1  ;;  %v1310_v48 = vpop.eup %1309  ;;  %1321 = vtanh.f32 %v689_v51  ;;  %911 = vmatpush.msra.mxu2 %v1308_v29  ;;  %894 = vmatpush.msra.mxu1 %v1294_v26 }
 0x15d   : > { %v1312_v49 = vpop.eup %1311  ;;  %931 = vmatpush.msra.mxu3 %v1310_v48  ;;  %1165 = vmatmul.msk.f32.vlgmr.msra.gmra.mxu0 %vm571_vm0, %v1881_v42  ;;  %1323 = vtanh.f32 %v718_v63  ;;  %v750_v0 = vadd.f32 %v749_v27, %v1859_v40  ;;  %v853_v20 = vpop.permute.xlu0 %852 }
 0x15e   : > { %v1314_v50 = vpop.eup %1313  ;;  %1166 = vmatmul.msk.f32.vlgmr.msra.gmra.mxu1 %vm571_vm0, %v1881_v42  ;;  %912 = vmatpush.msra.mxu2 %v1312_v49  ;;  %1325 = vtanh.f32 %v747_v7  ;;  %v855_v47 = vperm.slane %v853_v20, 0 }
 0x15f   : > { %v1316_v54 = vpop.eup %1315  ;;  %932 = vmatpush.msra.mxu3 %v1314_v50 }
 0x160   : > { %v1318_v58 = vpop.eup %1317  ;;  %913 = vmatpush.msra.mxu2 %v1316_v54 }
 0x161   : > { %v1320_v38 = vpop.eup %1319  ;;  %933 = vmatpush.msra.mxu3 %v1318_v58 }
 0x162   : > { %v1322_v56 = vpop.eup %1321  ;;  %v778_v52 = vpop.f32.mrf.mxu2  ;;  %914 = vmatpush.msra.mxu2 %v1320_v38 }
 0x163   : > { %v723_v59 = vpop.f32.mrf.mxu0  ;;  %v807_v62 = vpop.f32.mrf.mxu3  ;;  %934 = vmatpush.msra.mxu3 %v1322_v56  ;;  %1167 = vmatmul.msk.f32.vlgmr.msra.gmra.mxu2 %vm571_vm0, %v1881_v42  ;;  %v779_v25 = vadd.f32 %v778_v52, %v1859_v40 }
 0x164   : > { %v752_v60 = vpop.f32.mrf.mxu1  ;;  %1168 = vmatmul.msk.f32.vlgmr.msra.gmra.mxu3 %vm571_vm0, %v1881_v42  ;;  %v724_v35 = vadd.f32 %v723_v59, %v1848_v10  ;;  %v1324_v57 = vpop.eup %1323  ;;  %v808_v12 = vadd.f32 %v807_v62, %v1859_v40 }
 0x165   : > { %v753_v13 = vadd.f32 %v752_v60, %v1848_v10  ;;  %v1326_v21 = vpop.eup %1325 }
 0x16a   : > { %v781_v9 = vpop.f32.mrf.mxu2 }
 0x16b   : > { %v726_v61 = vpop.f32.mrf.mxu0  ;;  %v810_v22 = vpop.f32.mrf.mxu3  ;;  %v782_v23 = vadd.f32 %v781_v9, %v1848_v10 }
 0x16c   : > { %v727_v5 = vadd.f32 %v726_v61, %v1850_v36  ;;  %v755_v15 = vpop.f32.mrf.mxu1  ;;  %v811_v31 = vadd.f32 %v810_v22, %v1848_v10  ;;  %v805_v10 = vadd.f32 %v1876_v55, %v1852_v16 }
 0x16d   : > { %v756_v33 = vadd.f32 %v755_v15, %v1850_v36 }
 0x16e   : > { %1327 = vtanh.f32 %v727_v5 }
 0x16f   : > { %1329 = vtanh.f32 %v756_v33 }
 0x170   : > { %1331 = vtanh.f32 %v724_v35 }
 0x171   : > { %1333 = vtanh.f32 %v753_v13 }
 0x172   : > { %v784_v14 = vpop.f32.mrf.mxu2  ;;  %1335 = vtanh.f32 %v721_v53 }
 0x173   : > { %v785_v37 = vadd.f32 %v784_v14, %v1850_v36  ;;  %v813_v18 = vpop.f32.mrf.mxu3  ;;  %1337 = vtanh.f32 %v750_v0 }
 0x174   : > { %v814_v19 = vadd.f32 %v813_v18, %v1850_v36  ;;  %v1328_v8 = vpop.eup %1327 }
 0x175   : > { %1339 = vtanh.f32 %v785_v37  ;;  %v1330_v11 = vpop.eup %1329  ;;  %951 = vmatpush.msrb.mxu0 %v1328_v8 }
 0x176   : > { %1341 = vtanh.f32 %v814_v19  ;;  %v1332_v1 = vpop.eup %1331  ;;  %971 = vmatpush.msrb.mxu1 %v1330_v11 }
 0x177   : > { %1343 = vtanh.f32 %v782_v23  ;;  %v1334_v34 = vpop.eup %1333  ;;  %952 = vmatpush.msrb.mxu0 %v1332_v1 }
 0x178   : > { %1345 = vtanh.f32 %v811_v31  ;;  %v1336_v36 = vpop.eup %1335  ;;  %972 = vmatpush.msrb.mxu1 %v1334_v34 }
 0x179   : > { %1347 = vtanh.f32 %v779_v25  ;;  %v1338_v43 = vpop.eup %1337  ;;  %953 = vmatpush.msrb.mxu0 %v1336_v36 }
 0x17a   : > { %1349 = vtanh.f32 %v808_v12  ;;  %973 = vmatpush.msrb.mxu1 %v1338_v43 }
 0x17b   : > { %v1340_v40 = vpop.eup %1339  ;;  %1351 = vtanh.f32 %v776_v28  ;;  %954 = vmatpush.msrb.mxu0 %v1324_v57 }
 0x17c   : > { %v1342_v4 = vpop.eup %1341  ;;  %1353 = vtanh.f32 %v805_v10  ;;  %991 = vmatpush.msrb.mxu2 %v1340_v40  ;;  %974 = vmatpush.msrb.mxu1 %v1326_v21 }
 0x17d   : > { %v1344_v44 = vpop.eup %1343  ;;  %1011 = vmatpush.msrb.mxu3 %v1342_v4  ;;  %1169 = vmatmul.msk.f32.vlgmr.msrb.gmra.mxu0 %vm571_vm0, %v1881_v42 }
 0x17e   : > { %v1346_v26 = vpop.eup %1345  ;;  %1170 = vmatmul.msk.f32.vlgmr.msrb.gmra.mxu1 %vm571_vm0, %v1881_v42  ;;  %992 = vmatpush.msrb.mxu2 %v1344_v44 }
 0x17f   : > { %v1348_v16 = vpop.eup %1347  ;;  %1012 = vmatpush.msrb.mxu3 %v1346_v26 }
 0x180   : > { %v1350_v17 = vpop.eup %1349  ;;  %993 = vmatpush.msrb.mxu2 %v1348_v16 }
 0x181   : > { %v1352_v2 = vpop.eup %1351  ;;  %1013 = vmatpush.msrb.mxu3 %v1350_v17 }
 0x182   : > { %v1354_v45 = vpop.eup %1353  ;;  %994 = vmatpush.msrb.mxu2 %v1352_v2 }
 0x183   : > { %1014 = vmatpush.msrb.mxu3 %v1354_v45  ;;  %1171 = vmatmul.msk.f32.vlgmr.msrb.gmra.mxu2 %vm571_vm0, %v1881_v42 }
 0x184   : > { %1172 = vmatmul.msk.f32.vlgmr.msrb.gmra.mxu3 %vm571_vm0, %v1881_v42 }
 0x1da   : > { %v876_v46 = vpop.f32.mrf.mxu0 }
 0x1db   : > { %v896_v3 = vpop.f32.mrf.mxu1  ;;  %v877_v52 = vadd.f32 %v876_v46, %v855_v47 }
 0x1dc   : > { %v897_v41 = vadd.f32 %v896_v3, %v855_v47 }
 0x1de   : > { %v1027_v48 = vrot.slane %v897_v41, 7 }
 0x1e0   : > { %v1035_v63 = vsel %vm1034_vm2, %v877_v52, %v1027_v48 }
 0x1e6   : > { %v916_v24 = vpop.f32.mrf.mxu2 }
 0x1e7   : > { %v936_v30 = vpop.f32.mrf.mxu3  ;;  %v917_v51 = vadd.f32 %v916_v24, %v855_v47 }
 0x1e8   : > { %v937_v32 = vadd.f32 %v936_v30, %v855_v47 }
 0x1e9   : > { %v1028_v27 = vrot.slane %v917_v51, 6 }
 0x1ea   : > { %v1029_v42 = vrot.slane %v937_v32, 5 }
 0x1ec   : > { %v1037_v59 = vsel %vm1036_vm1, %v1028_v27, %v1029_v42 }
 0x1ed   : > { %v1039_v61 = vsel %vm1038_vm5, %v1035_v63, %v1037_v59 }
 0x1fa   : > { %v956_v6 = vpop.f32.mrf.mxu0 }
 0x1fb   : > { %v976_v39 = vpop.f32.mrf.mxu1  ;;  %v957_v29 = vadd.f32 %v956_v6, %v855_v47 }
 0x1fc   : > { %v977_v55 = vadd.f32 %v976_v39, %v855_v47 }
 0x1fd   : > { %v1030_v54 = vrot.slane %v957_v29, 4 }
 0x1fe   : > { %v1031_v58 = vrot.slane %v977_v55, 3 }
 0x200   : > { %v1041_v7 = vsel %vm1040_vm3, %v1030_v54, %v1031_v58 }
 0x206   : > { %v996_v49 = vpop.f32.mrf.mxu2 }
 0x207   : > { %v1016_v50 = vpop.f32.mrf.mxu3  ;;  %v997_v38 = vadd.f32 %v996_v49, %v855_v47 }
 0x208   : > { %v1017_v56 = vadd.f32 %v1016_v50, %v855_v47 }
 0x209   : > { %v1032_v62 = vrot.slane %v997_v38, 2 }
 0x20a   : > { %v1033_v60 = vrot.slane %v1017_v56, 1 }
 0x20c   : > { %v1043_v9 = vsel %vm1042_vm4, %v1032_v62, %v1033_v60 }
 0x20d   : > { %v1045_v22 = vsel %vm1044_vm6, %v1041_v7, %v1043_v9 }
 0x20e   : > { %v1047_v5 = vsel %vm1046_vm7, %v1039_v61, %v1045_v22 }
 0x20f   : > { %1049 = vst [vmem:[%s274_s6] sm:$0xff] %v1047_v5 }
 0x210   : > { %1382 = shalt.err (!%p1379_p3)
}
 0x211   : > { %1177 = dma.vmem_to_hbm [thread:$0]  (%p1501_p5), %s1064_s14, 128, %s1066_s15, %s1051_s23  }
 0x212 PF: > { %p1183_p4 = scmp.ge.s32.totalorder %s1417_s29, 2  ;;  %s1077_s24 = sand.u32 1, %s1405_s26  }
 0x213   : > { %s1078_s25 = scalar_lea.sflag [#allocation4], %s1077_s24 }
 0x214   : > { %p1180_p7 = pnand %p1183_p4, %p1505_p6 }
 0x216   : > { %p1181_p8 = pneg %p1180_p7 }
 0x218   : > { %1400 = dma.done.wait (%p1181_p8), %s1078_s25, 128  }
 0x219   : > { %1402 = vsyncadd (%p1181_p8), %s1078_s25, 4294967168  ;;  %p19_p9 = scmp.ge.s32.totalorder %s1487_s8, 6   ;;  %s1968_s26 = smov %s1409_s27 }
 0x21a   : > { %s1969_s27 = smov %s1413_s28  ;;  %s1970_s28 = smov %s1499_s11 }
 0x21b   : > { %s1971_s29 = smov %s1487_s8  ;;  %21 = sbr.rel (!%p19_p9) target bundleno = 6 (0x6), region = 84 }
 0x220   :  { %1084 = vsyncpa [#allocation4], 1 }
 0x221   :  { %1086 = vsyncpa [#allocation4 + $0x1], 1 }

</bundles_post_ra>
